<compile_context>
chip_gen: v6e
topology: v6e:2x2x1
jax: 0.10.0
libtpu: 0.0.40
codegen_flags: <defaults>
</compile_context>

<pallas_src>
import jax
import jax.numpy as jnp
from jax.experimental import pallas as pl
from jax.experimental.pallas import tpu as pltpu


_SOFTPLUS_THRESHOLD = 20.0


def _softplus(x):
    # Matches torch.nn.Softplus(beta=1, threshold=20): x > 20 ? x : log1p(exp(x))
    safe = jnp.minimum(x, _SOFTPLUS_THRESHOLD)
    return jnp.where(x > _SOFTPLUS_THRESHOLD, x, jnp.log1p(jnp.exp(safe)))


def _cnn_expmart_kernel(x_ref, w1_ref, b1_ref, w2_ref, b2_ref, w3_ref, b3_ref,
                        o_ref):
    # x_ref: (C_in, tL) slab; weights are (out, in) like PyTorch Conv1d,
    # biases are (out, 1) so they broadcast over the lane (L) axis.
    x = x_ref[...].astype(jnp.float32)

    h1 = jnp.dot(w1_ref[...], x, preferred_element_type=jnp.float32)
    h1 = _softplus(h1 + b1_ref[...])

    h2 = jnp.dot(w2_ref[...], h1, preferred_element_type=jnp.float32)
    h2 = _softplus(h2 + b2_ref[...])

    h3 = jnp.dot(w3_ref[...], h2, preferred_element_type=jnp.float32)
    h3 = h3 + b3_ref[...]

    o_ref[...] = h3.astype(o_ref.dtype)


def _pick_length_tile(seq_len, max_tile=2048):
    """Largest lane-aligned tile that evenly divides L (falls back to full L)."""
    for cand in (2048, 1024, 512, 256, 128):
        if cand <= max_tile and seq_len % cand == 0:
            return cand
    # Ragged / short L: take the whole axis in one block (full-dim blocks are
    # always legal, and the store stays unmasked along the full lane extent).
    return seq_len


def cnn_expmart_forward(x_ncl, params):
    """x_ncl: (N, C_in, L) float32, NCL layout like the PyTorch module."""
    w1, b1, w2, b2, w3, b3 = params
    n, c_in, seq = x_ncl.shape
    hidden = w1.shape[0]
    num_outputs = w3.shape[0]

    t_l = _pick_length_tile(seq)
    grid = (n, seq // t_l)

    return pl.pallas_call(
        _cnn_expmart_kernel,
        out_shape=jax.ShapeDtypeStruct((n, num_outputs, seq), x_ncl.dtype),
        grid=grid,
        in_specs=[
            # activations: one batch row, all channels, a lane-dense L tile
            pl.BlockSpec((pl.Squeezed(), c_in, t_l), lambda b, l: (b, 0, l)),
            # weights/biases: constant index maps -> DMA'd once, stay resident
            pl.BlockSpec((hidden, c_in), lambda b, l: (0, 0)),
            pl.BlockSpec((hidden, 1), lambda b, l: (0, 0)),
            pl.BlockSpec((hidden, hidden), lambda b, l: (0, 0)),
            pl.BlockSpec((hidden, 1), lambda b, l: (0, 0)),
            pl.BlockSpec((num_outputs, hidden), lambda b, l: (0, 0)),
            pl.BlockSpec((num_outputs, 1), lambda b, l: (0, 0)),
        ],
        out_specs=pl.BlockSpec((pl.Squeezed(), num_outputs, t_l),
                               lambda b, l: (b, 0, l)),
        compiler_params=pltpu.CompilerParams(
            dimension_semantics=("parallel", "parallel")),
    )(x_ncl, w1, b1, w2, b2, w3, b3)


def init_params(key, input_size, hidden_size, num_outputs):
    """Deterministic init mimicking PyTorch Conv1d default (uniform +-1/sqrt(fan_in)).

    Weights are stored in PyTorch Conv1d orientation (out_channels, in_channels)
    (kernel_size=1 squeezed away); biases are (out_channels, 1).
    """
    ks = jax.random.split(key, 6)

    def u(k, shape, fan_in):
        bound = 1.0 / jnp.sqrt(jnp.float32(fan_in))
        return jax.random.uniform(k, shape, jnp.float32, -bound, bound)

    w1 = u(ks[0], (hidden_size, input_size), input_size)
    b1 = u(ks[1], (hidden_size, 1), input_size)
    w2 = u(ks[2], (hidden_size, hidden_size), hidden_size)
    b2 = u(ks[3], (hidden_size, 1), hidden_size)
    w3 = u(ks[4], (num_outputs, hidden_size), hidden_size)
    b3 = u(ks[5], (num_outputs, 1), hidden_size)
    return (w1, b1, w2, b2, w3, b3)


def reference_forward(x_ncl, params):
    """Pure-JAX reference of the PyTorch module for a sanity check."""
    w1, b1, w2, b2, w3, b3 = params
    h = _softplus(jnp.einsum('oc,ncl->nol', w1, x_ncl) + b1[None])
    h = _softplus(jnp.einsum('oc,ncl->nol', w2, h) + b2[None])
    return jnp.einsum('oc,ncl->nol', w3, h) + b3[None]


if __name__ == "__main__":
    key = jax.random.PRNGKey(0)
    k_x, k_x2, k_p = jax.random.split(key, 3)

    batch = 2
    input_size = 4       # in_channels
    seq = 16             # Conv1d length dimension
    hidden_size = 32
    num_outputs = 3

    params = init_params(k_p, input_size, hidden_size, num_outputs)

    # Small shape (L not lane-aligned -> single full-L block per batch row).
    x = jax.random.normal(k_x, (batch, input_size, seq), jnp.float32)
    out = jax.block_until_ready(cnn_expmart_forward(x, params))
    ref = reference_forward(x, params)
    assert out.shape == (batch, num_outputs, seq), out.shape
    assert jnp.allclose(out, ref, atol=1e-5, rtol=1e-5), "mismatch vs reference"

    # Lane-aligned L (exercises the tiled-L path with a 256-wide lane tile).
    seq2 = 256
    x2 = jax.random.normal(k_x2, (batch, input_size, seq2), jnp.float32)
    out2 = jax.block_until_ready(cnn_expmart_forward(x2, params))
    ref2 = reference_forward(x2, params)
    assert out2.shape == (batch, num_outputs, seq2), out2.shape
    assert jnp.allclose(out2, ref2, atol=1e-5, rtol=1e-5), "mismatch vs reference"

    print("KERNEL_OK")
</pallas_src>

<mosaic_0001>
module attributes {stable_mosaic.version = 11 : i64} {
  func.func @_cnn_expmart_kernel(%arg0: i32, %arg1: i32, %arg2: memref<1x4x16xf32, #tpu.memory_space<vmem>>, %arg3: memref<32x4xf32, #tpu.memory_space<vmem>>, %arg4: memref<32x1xf32, #tpu.memory_space<vmem>>, %arg5: memref<32x32xf32, #tpu.memory_space<vmem>>, %arg6: memref<32x1xf32, #tpu.memory_space<vmem>>, %arg7: memref<3x32xf32, #tpu.memory_space<vmem>>, %arg8: memref<3x1xf32, #tpu.memory_space<vmem>>, %arg9: memref<1x3x16xf32, #tpu.memory_space<vmem>>) attributes {dimension_semantics = [#tpu.dimension_semantics<parallel>, #tpu.dimension_semantics<parallel>], iteration_bounds = array<i64: 2, 1>, scalar_prefetch = 0 : i64, scratch_operands = 0 : i64, tpu.core_type = #tpu.core_type<tc>, window_params = [{transform_indices = @transform_0, window_bounds = array<i64: 1, 4, 16>}, {pipeline_mode = #tpu.pipeline_mode<synchronous>, transform_indices = @transform_1, window_bounds = array<i64: 32, 4>}, {pipeline_mode = #tpu.pipeline_mode<synchronous>, transform_indices = @transform_2, window_bounds = array<i64: 32, 1>}, {pipeline_mode = #tpu.pipeline_mode<synchronous>, transform_indices = @transform_3, window_bounds = array<i64: 32, 32>}, {pipeline_mode = #tpu.pipeline_mode<synchronous>, transform_indices = @transform_4, window_bounds = array<i64: 32, 1>}, {pipeline_mode = #tpu.pipeline_mode<synchronous>, transform_indices = @transform_5, window_bounds = array<i64: 3, 32>}, {pipeline_mode = #tpu.pipeline_mode<synchronous>, transform_indices = @transform_6, window_bounds = array<i64: 3, 1>}, {transform_indices = @transform_7, window_bounds = array<i64: 1, 3, 16>}]} {
    %c0 = arith.constant 0 : index
    %c0_0 = arith.constant 0 : index
    %c0_1 = arith.constant 0 : index
    %0 = vector.load %arg2[%c0, %c0_0, %c0_1] : memref<1x4x16xf32, #tpu.memory_space<vmem>>, vector<1x4x16xf32>
    %1 = vector.shape_cast %0 : vector<1x4x16xf32> to vector<4x16xf32>
    %c0_2 = arith.constant 0 : index
    %c0_3 = arith.constant 0 : index
    %2 = vector.load %arg3[%c0_2, %c0_3] : memref<32x4xf32, #tpu.memory_space<vmem>>, vector<32x4xf32>
    %cst = arith.constant dense<0.000000e+00> : vector<32x16xf32>
    %3 = tpu.matmul %2, %1, %cst {dimension_numbers = #tpu.dot_dimension_numbers<[1], [0], [0], [1], [0, 0, 1, 1], [], []>} : vector<32x4xf32>, vector<4x16xf32>, vector<32x16xf32> -> vector<32x16xf32>
    %c0_4 = arith.constant 0 : index
    %c0_5 = arith.constant 0 : index
    %4 = vector.load %arg4[%c0_4, %c0_5] : memref<32x1xf32, #tpu.memory_space<vmem>>, vector<32x1xf32>
    %5 = vector.broadcast %4 : vector<32x1xf32> to vector<32x16xf32>
    %6 = arith.addf %3, %5 : vector<32x16xf32>
    %cst_6 = arith.constant 2.000000e+01 : f32
    %7 = vector.broadcast %cst_6 : f32 to vector<32x16xf32>
    %8 = arith.minimumf %6, %7 : vector<32x16xf32>
    %cst_7 = arith.constant 2.000000e+01 : f32
    %9 = vector.broadcast %cst_7 : f32 to vector<32x16xf32>
    %10 = arith.cmpf ogt, %6, %9 : vector<32x16xf32>
    %11 = math.exp %8 : vector<32x16xf32>
    %12 = math.log1p %11 : vector<32x16xf32>
    %13 = arith.select %10, %6, %12 : vector<32x16xi1>, vector<32x16xf32>
    %c0_8 = arith.constant 0 : index
    %c0_9 = arith.constant 0 : index
    %14 = vector.load %arg5[%c0_8, %c0_9] : memref<32x32xf32, #tpu.memory_space<vmem>>, vector<32x32xf32>
    %cst_10 = arith.constant dense<0.000000e+00> : vector<32x16xf32>
    %15 = tpu.matmul %14, %13, %cst_10 {dimension_numbers = #tpu.dot_dimension_numbers<[1], [0], [0], [1], [0, 0, 1, 1], [], []>} : vector<32x32xf32>, vector<32x16xf32>, vector<32x16xf32> -> vector<32x16xf32>
    %c0_11 = arith.constant 0 : index
    %c0_12 = arith.constant 0 : index
    %16 = vector.load %arg6[%c0_11, %c0_12] : memref<32x1xf32, #tpu.memory_space<vmem>>, vector<32x1xf32>
    %17 = vector.broadcast %16 : vector<32x1xf32> to vector<32x16xf32>
    %18 = arith.addf %15, %17 : vector<32x16xf32>
    %cst_13 = arith.constant 2.000000e+01 : f32
    %19 = vector.broadcast %cst_13 : f32 to vector<32x16xf32>
    %20 = arith.minimumf %18, %19 : vector<32x16xf32>
    %cst_14 = arith.constant 2.000000e+01 : f32
    %21 = vector.broadcast %cst_14 : f32 to vector<32x16xf32>
    %22 = arith.cmpf ogt, %18, %21 : vector<32x16xf32>
    %23 = math.exp %20 : vector<32x16xf32>
    %24 = math.log1p %23 : vector<32x16xf32>
    %25 = arith.select %22, %18, %24 : vector<32x16xi1>, vector<32x16xf32>
    %c0_15 = arith.constant 0 : index
    %c0_16 = arith.constant 0 : index
    %26 = vector.load %arg7[%c0_15, %c0_16] : memref<3x32xf32, #tpu.memory_space<vmem>>, vector<3x32xf32>
    %cst_17 = arith.constant dense<0.000000e+00> : vector<3x16xf32>
    %27 = tpu.matmul %26, %25, %cst_17 {dimension_numbers = #tpu.dot_dimension_numbers<[1], [0], [0], [1], [0, 0, 1, 1], [], []>} : vector<3x32xf32>, vector<32x16xf32>, vector<3x16xf32> -> vector<3x16xf32>
    %c0_18 = arith.constant 0 : index
    %c0_19 = arith.constant 0 : index
    %28 = vector.load %arg8[%c0_18, %c0_19] : memref<3x1xf32, #tpu.memory_space<vmem>>, vector<3x1xf32>
    %29 = vector.broadcast %28 : vector<3x1xf32> to vector<3x16xf32>
    %30 = arith.addf %27, %29 : vector<3x16xf32>
    %c0_20 = arith.constant 0 : index
    %c0_21 = arith.constant 0 : index
    %c0_22 = arith.constant 0 : index
    %31 = vector.load %arg9[%c0_20, %c0_21, %c0_22] : memref<1x3x16xf32, #tpu.memory_space<vmem>>, vector<1x3x16xf32>
    %32 = vector.shape_cast %31 : vector<1x3x16xf32> to vector<3x16xf32>
    %33 = vector.shape_cast %30 : vector<3x16xf32> to vector<1x3x16xf32>
    tpu.vector_store %arg9[%c0_20, %c0_21, %c0_22], %33 {strides = array<i32>} : memref<1x3x16xf32, #tpu.memory_space<vmem>>, vector<1x3x16xf32>,
    return
  }
  func.func @transform_0(%arg0: i32, %arg1: i32) -> (i32, i32, i32) {
    %c0_i32 = arith.constant 0 : i32
    %c0_i32_0 = arith.constant 0 : i32
    return %arg0, %c0_i32, %arg1 : i32, i32, i32
  }
  func.func @transform_1(%arg0: i32, %arg1: i32) -> (i32, i32) {
    %c0_i32 = arith.constant 0 : i32
    %c0_i32_0 = arith.constant 0 : i32
    %c0_i32_1 = arith.constant 0 : i32
    return %c0_i32, %c0_i32_0 : i32, i32
  }
  func.func @transform_2(%arg0: i32, %arg1: i32) -> (i32, i32) {
    %c0_i32 = arith.constant 0 : i32
    %c0_i32_0 = arith.constant 0 : i32
    %c0_i32_1 = arith.constant 0 : i32
    return %c0_i32, %c0_i32_0 : i32, i32
  }
  func.func @transform_3(%arg0: i32, %arg1: i32) -> (i32, i32) {
    %c0_i32 = arith.constant 0 : i32
    %c0_i32_0 = arith.constant 0 : i32
    %c0_i32_1 = arith.constant 0 : i32
    return %c0_i32, %c0_i32_0 : i32, i32
  }
  func.func @transform_4(%arg0: i32, %arg1: i32) -> (i32, i32) {
    %c0_i32 = arith.constant 0 : i32
    %c0_i32_0 = arith.constant 0 : i32
    %c0_i32_1 = arith.constant 0 : i32
    return %c0_i32, %c0_i32_0 : i32, i32
  }
  func.func @transform_5(%arg0: i32, %arg1: i32) -> (i32, i32) {
    %c0_i32 = arith.constant 0 : i32
    %c0_i32_0 = arith.constant 0 : i32
    %c0_i32_1 = arith.constant 0 : i32
    return %c0_i32, %c0_i32_0 : i32, i32
  }
  func.func @transform_6(%arg0: i32, %arg1: i32) -> (i32, i32) {
    %c0_i32 = arith.constant 0 : i32
    %c0_i32_0 = arith.constant 0 : i32
    %c0_i32_1 = arith.constant 0 : i32
    return %c0_i32, %c0_i32_0 : i32, i32
  }
  func.func @transform_7(%arg0: i32, %arg1: i32) -> (i32, i32, i32) {
    %c0_i32 = arith.constant 0 : i32
    %c0_i32_0 = arith.constant 0 : i32
    return %arg0, %c0_i32, %arg1 : i32, i32, i32
  }
}

</mosaic_0001>

<bundles_post_ra>
// kernel: tpu_custom_call.1
= control target key start
LH: loop header
LB: loop body
LE: loop exit
PB: predicated region body
PF: predicated region fallthrough
CT: control target
= control target key end

     0   :  { %s1028_s24 = smov 0   ;;  %s1030_s25 = smov 0   ;;  %s1156_s0 = inlined_call_operand.vmem [shape: f32[2,4,16], index: 0, kind: input, shape index: {}]   ;;  %s1157_s1 = inlined_call_operand.vmem [shape: f32[32,4], index: 1, kind: input, shape index: {}]   ;;  %s1158_s2 = inlined_call_operand.vmem [shape: f32[32,1], index: 2, kind: input, shape index: {}]   ;;  %s1159_s3 = inlined_call_operand.vmem [shape: f32[32,32], index: 3, kind: input, shape index: {}]   ;;  %s1160_s4 = inlined_call_operand.vmem [shape: f32[32,1], index: 4, kind: input, shape index: {}]   ;;  %s1161_s5 = inlined_call_operand.vmem [shape: f32[3,32], index: 5, kind: input, shape index: {}]   ;;  %s1162_s6 = inlined_call_operand.vmem [shape: f32[3,1], index: 6, kind: input, shape index: {}]   ;;  %s1163_s7 = inlined_call_operand.vmem [shape: f32[2,3,16], index: 7, kind: output, shape index: {}]  }
   0x1   :  { %s1032_s26 = smov 0  }
   0x2 LB: > { %s29_s27 = sadd.s32 1, %s979_s25  ;;  %p834_p0 = scmp.ge.s32.totalorder %s983_s26, 1  ;;  %s983_s26 = sphi %s1032_s26, %s17_s26   ;;  %s979_s25 = sphi %s1030_s25, %s1165_s25   ;;  %s975_s24 = sphi %s1028_s24, %s1164_s24  }
   0x3   : > { %p31_p1 = scmp.ge.s32.totalorder %s29_s27, 2  ;;  %p255_p2 = scmp.lt.s32.totalorder %s983_s26, 3 }
   0x5   : > { %s1167_s27 = smov (%p31_p1, %s29_s27), 0  ;;  %p256_p3 = pnand %p834_p0, %p255_p2 }
   0x6   : > { %p291_p4 = scmp.lt.s32.totalorder (!%p256_p3), %s975_s24, 1 }
   0x7   : > { %259 = sbr.rel (%p256_p3) target bundleno = 703 (0x2bf), region = 48 }
   0xc   : > { %v306_v0 = vld [vmem:[%s1157_s1] sm:$0xff]  ;;  %vm334_vm0 = vcmask 31744   ;;  %v313_v1 = vld [vmem:[%s1158_s2 + $0x18] sm:$0xff]  ;;  %s1169_s24 = smov (!%p291_p4, %s975_s24), 1  ;;  %v985_v2 = vmov 0   ;;  %v311_v3 = vld [vmem:[%s1158_s2 + $0x8] sm:$0xff] }
   0xd   : > { %869 = vmatprep.mubr.msk.f32.mxu0 %vm334_vm0, %v306_v0  ;;  %927 = vset.pattern.permute.xlu0 %v985_v2  ;;  %s835_s11 = sshll.u32 %s1169_s24, 2  ;;  %vm347_vm1 = vcmask 1043456   ;;  %v312_v4 = vld [vmem:[%s1158_s2 + $0x10] sm:$0xff]  ;;  %v310_v5 = vld [vmem:[%s1158_s2] sm:$0xff]  ;;  %v307_v7 = vld [vmem:[%s1157_s1 + $0x8] sm:$0xff]  ;;  %vm520_vm2 = vcmask 261120  }
   0xe   : > { %928 = vset.pattern.permute.xlu1 %v985_v2  ;;  %331 = vperm.xlu0 %927, %v313_v1   ;;  %s297_s16 = scalar_lea.vmem %s1156_s0, %s835_s11  ;;  %v308_v8 = vld [vmem:[%s1157_s1 + $0x10] sm:$0xff]  ;;  %v499_v9 = vld [vmem:[%s1160_s4 + $0x18] sm:$0xff]  ;;  %v497_v12 = vld [vmem:[%s1160_s4 + $0x8] sm:$0xff]  ;;  %vm987_vm11 = vmmov 0   ;;  %s304_s10 = scalar_lea.vmem %s1163_s7, %s835_s11 }
   0xf   : > { %321 = vperm.xlu1 %928, %v311_v3   ;;  %v305_v6 = vld [vmem:[%s297_s16] sm:$0xf]  ;;  %v498_v10 = vld [vmem:[%s1160_s4 + $0x10] sm:$0xff]  ;;  %v309_v11 = vld [vmem:[%s1157_s1 + $0x18] sm:$0xff] }
  0x10   : > { %867 = vmatprep.subr.msk.mxu0 %vm347_vm1, %v305_v6  ;;  %v496_v13 = vld [vmem:[%s1160_s4] sm:$0xff] }
  0x11   : > { %868 = vmatpush3.msk.msra.mxu0 %vm347_vm1, %v305_v6  ;;  %v675_v14 = vld [vmem:[%s1162_s6] sm:$0x7] }
  0x12   : > { %326 = vperm.xlu0 %927, %v312_v4   ;;  %870 = vmatmul.mubr.msk.f32.vlgmr.msra.gmra.mxu0 %vm334_vm0, %v307_v7  ;;  %v492_v15 = vld [vmem:[%s1159_s3] sm:$0xff] }
  0x13   : > { %316 = vperm.xlu1 %928, %v310_v5   ;;  %872 = vmatprep.mubr.msk.f32.mxu0 %vm334_vm0, %v308_v8 }
  0x14   : > { %883 = vmatprep.mubr.msk.f32.mxu1 %vm520_vm2, %v492_v15  ;;  %v986_v15 = vmov 0.0  }
  0x15   : > { %889 = vmatprep.subr.mxu0 %v986_v15 }
  0x16   : > { %517 = vperm.xlu0 %927, %v499_v9   ;;  %873 = vmatmul.mubr.msk.f32.gmra.mxu0 %vm334_vm0, %v309_v11 }
  0x17   : > { %512 = vperm.xlu1 %928, %v498_v10   ;;  %897 = vmatprep.mubr.msk.f32.mxu0 %vm987_vm11, %v986_v15 }
  0x1a   : > { %507 = vperm.xlu0 %927, %v497_v12   ;;  %v493_v12 = vld [vmem:[%s1159_s3 + $0x8] sm:$0xff] }
  0x1b   : > { %502 = vperm.xlu1 %928, %v496_v13   ;;  %v494_v13 = vld [vmem:[%s1159_s3 + $0x10] sm:$0xff] }
  0x1e   : > { %678 = vperm.xlu0 %927, %v675_v14   ;;  %v495_v14 = vld [vmem:[%s1159_s3 + $0x18] sm:$0xff] }
  0x89   : > { %v332_v17 = vpop.permute.xlu0 %331 }
  0x8a   : > { %v322_v16 = vpop.permute.xlu1 %321 }
  0x8d   : > { %v327_v28 = vpop.permute.xlu0 %326 }
  0x8e   : > { %v317_v20 = vpop.permute.xlu1 %316 }
  0xd2   : > { %v871_v18 = vpop.f32.mrf.mxu0 }
  0xd3   : > { %v1101_v19 = vadd.f32 %v871_v18, %v322_v16  ;;  %v518_v16 = vpop.permute.xlu0 %517 }
  0xd4   : > { %v417_v21 = vpop.f32.mrf.mxu0 }
  0xd5   : > { %v437_v22 = vmin.f32 %v1101_v19, 20.0  ;;  %v1104_v23 = vadd.f32 %v417_v21, %v317_v20  ;;  %vm441_vm9 = vcmp.gt.f32.partialorder %v1101_v19, 20.0 }
  0xd6   : > { %v874_v24 = vpop.f32.mrf.mxu0 }
  0xd7   : > { %v446_v25 = vmul.f32 1.442695, %v437_v22  ;;  %v436_v26 = vmin.f32 %v1104_v23, 20.0  ;;  %v433_v27 = vadd.f32 %v874_v24, %v332_v17  ;;  %vm440_vm10 = vcmp.gt.f32.partialorder %v1104_v23, 20.0  ;;  %v513_v17 = vpop.permute.xlu1 %512  ;;  %v508_v18 = vpop.permute.xlu0 %507 }
  0xd8   : > { %v427_v29 = vpop.f32.mrf.mxu0 }
  0xd9   : > { %929 = vpow2.f32 %v446_v25  ;;  %v444_v30 = vmul.f32 1.442695, %v436_v26  ;;  %v439_v31 = vmin.f32 %v433_v27, 20.0  ;;  %v428_v32 = vadd.f32 %v427_v29, %v327_v28 }
  0xda   : > { %vm443_vm3 = vcmp.gt.f32.partialorder %v433_v27, 20.0 }
  0xdb   : > { %931 = vpow2.f32 %v444_v30  ;;  %v450_v33 = vmul.f32 1.442695, %v439_v31  ;;  %v438_v34 = vmin.f32 %v428_v32, 20.0  ;;  %vm442_vm7 = vcmp.gt.f32.partialorder %v428_v32, 20.0  ;;  %v503_v21 = vpop.permute.xlu1 %502 }
  0xdd   : > { %933 = vpow2.f32 %v450_v33  ;;  %v448_v35 = vmul.f32 1.442695, %v438_v34 }
  0xdf   : > { %935 = vpow2.f32 %v448_v35 }
  0xe6   : > { %v930_v36 = vpop.eup %929 }
  0xe7   : > { %v461_v37 = vadd.f32 1.0, %v930_v36  ;;  %v464_v45 = vmul.f32 -0.5, %v930_v36  ;;  %v467_v56 = vand.u32 2147483647, %v930_v36 }
  0xe8   : > { %v932_v38 = vpop.eup %931 }
  0xe9   : > { %v452_v39 = vadd.f32 1.0, %v932_v38  ;;  %937 = vlog2.f32 %v461_v37  ;;  %v455_v48 = vmul.f32 -0.5, %v932_v38  ;;  %v465_v51 = vadd.f32 1.0, %v464_v45 }
  0xea   : > { %v934_v40 = vpop.eup %933  ;;  %v458_v63 = vand.u32 2147483647, %v932_v38  ;;  %vm468_vm6 = vcmp.lt.f32.partialorder %v467_v56, 0.0004427343 }
  0xeb   : > { %v479_v41 = vadd.f32 1.0, %v934_v40  ;;  %939 = vlog2.f32 %v452_v39  ;;  %v482_v44 = vmul.f32 -0.5, %v934_v40  ;;  %v485_v50 = vand.u32 2147483647, %v934_v40 }
  0xec   : > { %v936_v42 = vpop.eup %935  ;;  %v456_v60 = vadd.f32 1.0, %v455_v48  ;;  %v466_v62 = vmul.f32 %v930_v36, %v465_v51  ;;  %vm459_vm8 = vcmp.lt.f32.partialorder %v458_v63, 0.0004427343 }
  0xed   : > { %941 = vlog2.f32 %v479_v41  ;;  %v470_v43 = vadd.f32 1.0, %v936_v42  ;;  %v473_v46 = vmul.f32 -0.5, %v936_v42  ;;  %v483_v47 = vadd.f32 1.0, %v482_v44 }
  0xee   : > { %v476_v55 = vand.u32 2147483647, %v936_v42  ;;  %vm486_vm4 = vcmp.lt.f32.partialorder %v485_v50, 0.0004427343  ;;  %v457_v7 = vmul.f32 %v932_v38, %v456_v60 }
  0xef   : > { %943 = vlog2.f32 %v470_v43  ;;  %v474_v53 = vadd.f32 1.0, %v473_v46  ;;  %v484_v58 = vmul.f32 %v934_v40, %v483_v47 }
  0xf0   : > { %vm477_vm5 = vcmp.lt.f32.partialorder %v476_v55, 0.0004427343 }
  0xf1   : > { %v475_v2 = vmul.f32 %v936_v42, %v474_v53 }
  0xf6   : > { %v938_v49 = vpop.eup %937 }
  0xf7   : > { %v463_v59 = vmul.f32 0.6931472, %v938_v49 }
  0xf8   : > { %v940_v52 = vpop.eup %939 }
  0xf9   : > { %v454_v3 = vmul.f32 0.6931472, %v940_v52  ;;  %v469_v6 = vsel %vm468_vm6, %v466_v62, %v463_v59 }
  0xfa   : > { %v942_v54 = vpop.eup %941  ;;  %v489_v10 = vsel %vm441_vm9, %v1101_v19, %v469_v6 }
  0xfb   : > { %v481_v57 = vmul.f32 0.6931472, %v942_v54  ;;  %v460_v9 = vsel %vm459_vm8, %v457_v7, %v454_v3 }
  0xfc   : > { %v944_v61 = vpop.eup %943  ;;  %v488_v11 = vsel %vm440_vm10, %v1104_v23, %v460_v9 }
  0xfd   : > { %v487_v0 = vsel %vm486_vm4, %v484_v58, %v481_v57  ;;  %v472_v1 = vmul.f32 0.6931472, %v944_v61 }
  0xfe   : > { %v491_v4 = vsel %vm443_vm3, %v433_v27, %v487_v0 }
  0xff   : > { %875 = vmatprep.subr.mxu1 %v491_v4  ;;  %v478_v5 = vsel %vm477_vm5, %v475_v2, %v472_v1  ;;  %vm754_vm5 = vcmask 124928  }
 0x100   : > { %876 = vmatpush3.msra.mxu1 %v491_v4  ;;  %v490_v8 = vsel %vm442_vm7, %v428_v32, %v478_v5 }
 0x101   : > { %877 = vmatprep.subr.mxu1 %v490_v8 }
 0x102   : > { %878 = vmatpush3.msra.mxu1 %v490_v8 }
 0x103   : > { %879 = vmatprep.subr.mxu1 %v489_v10 }
 0x104   : > { %880 = vmatpush3.msra.mxu1 %v489_v10 }
 0x105   : > { %881 = vmatprep.subr.mxu1 %v488_v11 }
 0x106   : > { %882 = vmatpush3.msra.mxu1 %v488_v11  ;;  %v674_v11 = vld [vmem:[%s1161_s5] sm:$0x7] }
 0x107   : > { %884 = vmatmul.mubr.msk.f32.vlgmr.msra.gmra.mxu1 %vm520_vm2, %v493_v12 }
 0x108   : > { %886 = vmatprep.mubr.msk.f32.mxu1 %vm520_vm2, %v494_v13  ;;  %v679_v13 = vpop.permute.xlu0 %678 }
 0x10b   : > { %887 = vmatmul.mubr.msk.f32.gmra.mxu1 %vm520_vm2, %v495_v14 }
 0x1c7   : > { %v885_v19 = vpop.f32.mrf.mxu1 }
 0x1c8   : > { %v1125_v20 = vadd.f32 %v885_v19, %v508_v18 }
 0x1c9   : > { %v599_v22 = vpop.f32.mrf.mxu1 }
 0x1ca   : > { %v619_v23 = vmin.f32 %v1125_v20, 20.0  ;;  %v1128_v24 = vadd.f32 %v599_v22, %v503_v21  ;;  %vm623_vm3 = vcmp.gt.f32.partialorder %v1125_v20, 20.0 }
 0x1cb   : > { %v888_v25 = vpop.f32.mrf.mxu1 }
 0x1cc   : > { %v628_v26 = vmul.f32 1.442695, %v619_v23  ;;  %v618_v27 = vmin.f32 %v1128_v24, 20.0  ;;  %v615_v28 = vadd.f32 %v888_v25, %v518_v16  ;;  %vm622_vm4 = vcmp.gt.f32.partialorder %v1128_v24, 20.0 }
 0x1cd   : > { %v609_v29 = vpop.f32.mrf.mxu1 }
 0x1ce   : > { %945 = vpow2.f32 %v628_v26  ;;  %v626_v30 = vmul.f32 1.442695, %v618_v27  ;;  %v621_v31 = vmin.f32 %v615_v28, 20.0  ;;  %v610_v32 = vadd.f32 %v609_v29, %v513_v17 }
 0x1cf   : > { %vm625_vm13 = vcmp.gt.f32.partialorder %v615_v28, 20.0 }
 0x1d0   : > { %947 = vpow2.f32 %v626_v30  ;;  %v632_v33 = vmul.f32 1.442695, %v621_v31  ;;  %v620_v34 = vmin.f32 %v610_v32, 20.0  ;;  %vm624_vm0 = vcmp.gt.f32.partialorder %v610_v32, 20.0 }
 0x1d2   : > { %949 = vpow2.f32 %v632_v33  ;;  %v630_v35 = vmul.f32 1.442695, %v620_v34 }
 0x1d4   : > { %951 = vpow2.f32 %v630_v35 }
 0x1db   : > { %v946_v36 = vpop.eup %945 }
 0x1dc   : > { %v643_v38 = vadd.f32 1.0, %v946_v36  ;;  %v646_v45 = vmul.f32 -0.5, %v946_v36  ;;  %v649_v58 = vand.u32 2147483647, %v946_v36 }
 0x1dd   : > { %v948_v37 = vpop.eup %947 }
 0x1de   : > { %v634_v40 = vadd.f32 1.0, %v948_v37  ;;  %953 = vlog2.f32 %v643_v38  ;;  %v637_v49 = vmul.f32 -0.5, %v948_v37  ;;  %v647_v51 = vadd.f32 1.0, %v646_v45 }
 0x1df   : > { %v950_v39 = vpop.eup %949  ;;  %v640_v0 = vand.u32 2147483647, %v948_v37  ;;  %vm650_vm15 = vcmp.lt.f32.partialorder %v649_v58, 0.0004427343 }
 0x1e0   : > { %v661_v41 = vadd.f32 1.0, %v950_v39  ;;  %v664_v44 = vmul.f32 -0.5, %v950_v39  ;;  %v667_v48 = vand.u32 2147483647, %v950_v39  ;;  %v638_v60 = vadd.f32 1.0, %v637_v49 }
 0x1e1   : > { %v952_v42 = vpop.eup %951  ;;  %v648_v63 = vmul.f32 %v946_v36, %v647_v51  ;;  %vm641_vm1 = vcmp.lt.f32.partialorder %v640_v0, 0.0004427343 }
 0x1e2   : > { %955 = vlog2.f32 %v661_v41  ;;  %v652_v43 = vadd.f32 1.0, %v952_v42  ;;  %v655_v46 = vmul.f32 -0.5, %v952_v42  ;;  %v665_v47 = vadd.f32 1.0, %v664_v44 }
 0x1e3   : > { %957 = vlog2.f32 %v634_v40  ;;  %v658_v57 = vand.u32 2147483647, %v952_v42  ;;  %vm668_vm12 = vcmp.lt.f32.partialorder %v667_v48, 0.0004427343  ;;  %v639_v7 = vmul.f32 %v948_v37, %v638_v60 }
 0x1e4   : > { %959 = vlog2.f32 %v652_v43  ;;  %v656_v53 = vadd.f32 1.0, %v655_v46  ;;  %v666_v56 = vmul.f32 %v950_v39, %v665_v47 }
 0x1e5   : > { %vm659_vm14 = vcmp.lt.f32.partialorder %v658_v57, 0.0004427343 }
 0x1e6   : > { %v657_v3 = vmul.f32 %v952_v42, %v656_v53 }
 0x1eb   : > { %v954_v50 = vpop.eup %953 }
 0x1ec   : > { %v645_v59 = vmul.f32 0.6931472, %v954_v50 }
 0x1ee   : > { %v651_v6 = vsel %vm650_vm15, %v648_v63, %v645_v59 }
 0x1ef   : > { %v956_v52 = vpop.eup %955  ;;  %v671_v10 = vsel %vm623_vm3, %v1125_v20, %v651_v6 }
 0x1f0   : > { %v958_v54 = vpop.eup %957  ;;  %v663_v55 = vmul.f32 0.6931472, %v956_v52 }
 0x1f1   : > { %v960_v61 = vpop.eup %959  ;;  %v636_v4 = vmul.f32 0.6931472, %v958_v54 }
 0x1f2   : > { %v669_v62 = vsel %vm668_vm12, %v666_v56, %v663_v55  ;;  %v654_v2 = vmul.f32 0.6931472, %v960_v61 }
 0x1f3   : > { %v673_v1 = vsel %vm625_vm13, %v615_v28, %v669_v62  ;;  %v642_v9 = vsel %vm641_vm1, %v639_v7, %v636_v4 }
 0x1f4   : > { %890 = vmatpush3.msra.mxu0 %v673_v1  ;;  %v660_v5 = vsel %vm659_vm14, %v657_v3, %v654_v2  ;;  %v670_v12 = vsel %vm622_vm4, %v1128_v24, %v642_v9 }
 0x1f5   : > { %891 = vmatprep.subr.mxu0 %v986_v15  ;;  %v672_v8 = vsel %vm624_vm0, %v610_v32, %v660_v5 }
 0x1f6   : > { %892 = vmatpush3.msra.mxu0 %v672_v8 }
 0x1f7   : > { %893 = vmatprep.subr.mxu0 %v986_v15 }
 0x1f8   : > { %894 = vmatpush3.msra.mxu0 %v671_v10 }
 0x1f9   : > { %895 = vmatprep.subr.mxu0 %v986_v15 }
 0x1fa   : > { %896 = vmatpush3.msra.mxu0 %v670_v12 }
 0x1fb   : > { %898 = vmatmul.mubr.msk.f32.vlgmr.msra.gmra.mxu0 %vm520_vm2, %v674_v11 }
 0x2bb   : > { %v750_v14 = vpop.f32.mrf.mxu0 }
 0x2bc   : > { %v751_v16 = vadd.f32 %v750_v14, %v679_v13 }
 0x2bd   : > { %v899_v17 = vpop.f32.mrf.mxu0 }
 0x2be   : > { %755 = vst.msk [vmem:[%s304_s10] sm:$0x7] %vm754_vm5, %v751_v16 }
 0x2bf PF: > { %s17_s26 = sadd.s32 1, %s983_s26   ;;  %s1164_s24 = smov %s979_s25 }
 0x2c0   : > { %p14_p5 = scmp.ge.s32.totalorder %s17_s26, 4   ;;  %s1165_s25 = smov %s1167_s27 }
 0x2c2   :  { %16 = sbr.rel (!%p14_p5) target bundleno = 2 (0x2), region = 78 }

</bundles_post_ra>
